<compile_context>
chip_gen: v7x
topology: tpu7x:2x2x1
jax: 0.10.0
libtpu: 0.0.40
codegen_flags: <defaults>
</compile_context>

<pallas_src>
import jax
import jax.numpy as jnp
from jax.experimental import pallas as pl
from jax.experimental.pallas import tpu as pltpu

BN_EPS = 1e-5
LEAKY_SLOPE = 0.1
_VMEM_LIMIT = 32 * 1024 * 1024  # safe on v5e/v6e (128 MiB phys) and v7x (64 MiB phys)


def _round_up(x, m):
    return (x + m - 1) // m * m


def _conv_stats_kernel(p_ref, w_ref, y_ref, stats_ref):
    """Per M-tile: y = patches @ weight (MXU, f32 accumulation); accumulate sum/sumsq."""
    y = jnp.dot(p_ref[...], w_ref[...], preferred_element_type=jnp.float32)  # [TM, OCp]
    y_ref[...] = y

    @pl.when(pl.program_id(0) == 0)
    def _():
        stats_ref[...] = jnp.zeros_like(stats_ref)

    stats_ref[0:1, :] = stats_ref[0:1, :] + jnp.sum(y, axis=0, keepdims=True)
    stats_ref[1:2, :] = stats_ref[1:2, :] + jnp.sum(y * y, axis=0, keepdims=True)


def _bn_act_kernel(y_ref, a_ref, b_ref, o_ref):
    """Per M-tile: folded BatchNorm affine + LeakyReLU(0.1)."""
    z = y_ref[...] * a_ref[0:1, :] + b_ref[0:1, :]
    o_ref[...] = jnp.where(z >= 0, z, LEAKY_SLOPE * z).astype(o_ref.dtype)


def yolo_conv(x_nchw, weight_oihw, gamma, beta, *, padding=0, stride=1,
              tm=256, compute_dtype=jnp.bfloat16):
    N, C, H, W = x_nchw.shape
    OC, _, KH, KW = weight_oihw.shape
    OH = (H + 2 * padding - KH) // stride + 1
    OW = (W + 2 * padding - KW) // stride + 1
    K = C * KH * KW
    M = N * OH * OW

    # Lane-dense padding: contraction dim and channel dim rounded up to 128.
    Kp = _round_up(K, 128)
    OCp = _round_up(OC, 128)
    TM = min(tm, _round_up(M, 8))           # rows per tile (multiple of 8)
    Mp = _round_up(M, TM)
    grid_m = Mp // TM

    # im2col in the wrapper; channel order (C, KH, KW) matches OIHW weight flatten.
    # TODO(synk): replace materialized im2col with an implicit in-kernel tap loop
    # (shifted pl.ds loads per (kh,kw)) to kill the KH*KW-times HBM inflation.
    xc = x_nchw.astype(compute_dtype)
    patches = jax.lax.conv_general_dilated_patches(
        xc, filter_shape=(KH, KW), window_strides=(stride, stride),
        padding=[(padding, padding), (padding, padding)])          # [N, K, OH, OW]
    patches = jnp.transpose(patches, (0, 2, 3, 1)).reshape(M, K)   # [M, K]

    patches_p = jnp.zeros((Mp, Kp), compute_dtype).at[:M, :K].set(patches)
    w2d = jnp.zeros((Kp, OCp), compute_dtype).at[:K, :OC].set(
        weight_oihw.reshape(OC, K).T.astype(compute_dtype))

    # ---- Pass 1: conv matmul + per-channel sum / sumsq accumulation ------------
    y2d, stats = pl.pallas_call(
        _conv_stats_kernel,
        out_shape=(jax.ShapeDtypeStruct((Mp, OCp), jnp.float32),
                   jax.ShapeDtypeStruct((8, OCp), jnp.float32)),
        grid=(grid_m,),
        in_specs=[
            pl.BlockSpec((TM, Kp), lambda i: (i, 0)),      # patches tile (pipelined)
            pl.BlockSpec((Kp, OCp), lambda i: (0, 0)),     # weight stays resident
        ],
        out_specs=(
            pl.BlockSpec((TM, OCp), lambda i: (i, 0)),     # conv output tile
            pl.BlockSpec((8, OCp), lambda i: (0, 0)),      # resident stats accumulator
        ),
        compiler_params=pltpu.CompilerParams(
            dimension_semantics=("arbitrary",),            # carries the stats accumulator
            vmem_limit_bytes=_VMEM_LIMIT),
    )(patches_p, w2d)

    # ---- Tiny per-channel math in JAX: fold BN into a single affine ------------
    m_f = jnp.float32(M)
    mean = stats[0] / m_f
    var = jnp.maximum(stats[1] / m_f - mean * mean, 0.0)   # biased var (torch BN train)
    gamma_p = jnp.zeros((OCp,), jnp.float32).at[:OC].set(gamma.astype(jnp.float32))
    beta_p = jnp.zeros((OCp,), jnp.float32).at[:OC].set(beta.astype(jnp.float32))
    a = gamma_p * jax.lax.rsqrt(var + BN_EPS)
    b = beta_p - mean * a
    a8 = jnp.broadcast_to(a[None, :], (8, OCp))
    b8 = jnp.broadcast_to(b[None, :], (8, OCp))

    # ---- Pass 2: y*a + b, LeakyReLU; parallel over M tiles; alias y's buffer ---
    out2d = pl.pallas_call(
        _bn_act_kernel,
        out_shape=jax.ShapeDtypeStruct((Mp, OCp), jnp.float32),
        grid=(grid_m,),
        in_specs=[
            pl.BlockSpec((TM, OCp), lambda i: (i, 0)),
            pl.BlockSpec((8, OCp), lambda i: (0, 0)),
            pl.BlockSpec((8, OCp), lambda i: (0, 0)),
        ],
        out_specs=pl.BlockSpec((TM, OCp), lambda i: (i, 0)),
        input_output_aliases={0: 0},                       # write back into y's buffer
        compiler_params=pltpu.CompilerParams(
            dimension_semantics=("parallel",),             # megacore splits M tiles
            vmem_limit_bytes=_VMEM_LIMIT),
    )(y2d, a8, b8)

    # Un-pad; return NCHW to match the PyTorch module (NHWC is the natural kernel
    # layout; the transpose exists only for interface parity).
    out = out2d[:M, :OC].reshape(N, OH, OW, OC)
    return jnp.transpose(out, (0, 3, 1, 2))


def reference(x, weight, gamma, beta, *, padding, stride):
    y = jax.lax.conv_general_dilated(
        x, weight, window_strides=(stride, stride),
        padding=[(padding, padding), (padding, padding)],
        dimension_numbers=("NCHW", "OIHW", "NCHW"))
    mean = jnp.mean(y, axis=(0, 2, 3), keepdims=True)
    var = jnp.var(y, axis=(0, 2, 3), keepdims=True)        # biased, like torch BN train
    yh = (y - mean) / jnp.sqrt(var + BN_EPS)
    yb = yh * gamma.reshape(1, -1, 1, 1) + beta.reshape(1, -1, 1, 1)
    return jnp.where(yb >= 0, yb, LEAKY_SLOPE * yb)


if __name__ == "__main__":
    # Small shapes consistent with the module: YOLOConv(4, 8, kernel_size=3, padding=1)
    N, C, H, W = 2, 4, 16, 16
    OC, KH, KW = 8, 3, 3
    padding, stride = 1, 1

    key = jax.random.PRNGKey(0)
    kx, kw = jax.random.split(key)
    x = jax.random.normal(kx, (N, C, H, W), dtype=jnp.float32)
    bound = 1.0 / (C * KH * KW) ** 0.5
    weight = jax.random.uniform(kw, (OC, C, KH, KW), jnp.float32, -bound, bound)
    gamma = jnp.ones((OC,), jnp.float32)   # BatchNorm2d default affine init
    beta = jnp.zeros((OC,), jnp.float32)

    ref = reference(x, weight, gamma, beta, padding=padding, stride=stride)

    # f32 MXU operands: strict numerical check against the XLA reference.
    run_f32 = jax.jit(lambda a, b, c, d: yolo_conv(
        a, b, c, d, padding=padding, stride=stride, compute_dtype=jnp.float32))
    out = jax.block_until_ready(run_f32(x, weight, gamma, beta))
    assert out.shape == (N, OC, H, W)
    assert jnp.allclose(out, ref, atol=1e-4, rtol=1e-4), float(jnp.max(jnp.abs(out - ref)))

    # bf16 MXU operands (v6e/v7x fast path), f32 accumulation/stats: loose check.
    run_bf16 = jax.jit(lambda a, b, c, d: yolo_conv(
        a, b, c, d, padding=padding, stride=stride, compute_dtype=jnp.bfloat16))
    out_bf = jax.block_until_ready(run_bf16(x, weight, gamma, beta))
    assert out_bf.shape == (N, OC, H, W)
    assert jnp.allclose(out_bf, ref, atol=1e-1, rtol=1e-1), float(jnp.max(jnp.abs(out_bf - ref)))

    print("KERNEL_OK")
</pallas_src>

<mosaic_0001>
module attributes {stable_mosaic.version = 11 : i64} {
  func.func @_conv_stats_kernel(%arg0: i32, %arg1: memref<256x128xf32, #tpu.memory_space<vmem>>, %arg2: memref<128x128xf32, #tpu.memory_space<vmem>>, %arg3: memref<256x128xf32, #tpu.memory_space<vmem>>, %arg4: memref<8x128xf32, #tpu.memory_space<vmem>>) attributes {dimension_semantics = [#tpu.dimension_semantics<arbitrary>], iteration_bounds = array<i64: 2>, scalar_prefetch = 0 : i64, scratch_operands = 0 : i64, tpu.core_type = #tpu.core_type<tc>, window_params = [{transform_indices = @transform_0, window_bounds = array<i64: 256, 128>}, {pipeline_mode = #tpu.pipeline_mode<synchronous>, transform_indices = @transform_1, window_bounds = array<i64: 128, 128>}, {transform_indices = @transform_2, window_bounds = array<i64: 256, 128>}, {pipeline_mode = #tpu.pipeline_mode<synchronous>, transform_indices = @transform_3, window_bounds = array<i64: 8, 128>}]} {
    %c0 = arith.constant 0 : index
    %c0_0 = arith.constant 0 : index
    %0 = vector.load %arg1[%c0, %c0_0] : memref<256x128xf32, #tpu.memory_space<vmem>>, vector<256x128xf32>
    %c0_1 = arith.constant 0 : index
    %c0_2 = arith.constant 0 : index
    %1 = vector.load %arg2[%c0_1, %c0_2] : memref<128x128xf32, #tpu.memory_space<vmem>>, vector<128x128xf32>
    %cst = arith.constant dense<0.000000e+00> : vector<256x128xf32>
    %2 = tpu.matmul %0, %1, %cst {dimension_numbers = #tpu.dot_dimension_numbers<[1], [0], [0], [1], [0, 0, 1, 1], [], []>} : vector<256x128xf32>, vector<128x128xf32>, vector<256x128xf32> -> vector<256x128xf32>
    %c0_3 = arith.constant 0 : index
    %c0_4 = arith.constant 0 : index
    %3 = vector.load %arg3[%c0_3, %c0_4] : memref<256x128xf32, #tpu.memory_space<vmem>>, vector<256x128xf32>
    tpu.vector_store %arg3[%c0_3, %c0_4], %2 {strides = array<i32>} : memref<256x128xf32, #tpu.memory_space<vmem>>, vector<256x128xf32>,
    %c0_i32 = arith.constant 0 : i32
    %4 = arith.cmpi eq, %arg0, %c0_i32 : i32
    %5 = arith.extui %4 : i1 to i32
    %c0_i32_5 = arith.constant 0 : i32
    %6 = arith.cmpi ne, %5, %c0_i32_5 : i32
    scf.if %6 {
      %cst_15 = arith.constant 0.000000e+00 : f32
      %18 = vector.broadcast %cst_15 : f32 to vector<8x128xf32>
      %c0_16 = arith.constant 0 : index
      %c0_17 = arith.constant 0 : index
      %19 = vector.load %arg4[%c0_16, %c0_17] : memref<8x128xf32, #tpu.memory_space<vmem>>, vector<8x128xf32>
      tpu.vector_store %arg4[%c0_16, %c0_17], %18 {strides = array<i32>} : memref<8x128xf32, #tpu.memory_space<vmem>>, vector<8x128xf32>,
    } else {
    }
    %c0_6 = arith.constant 0 : index
    %c0_7 = arith.constant 0 : index
    %7 = vector.load %arg4[%c0_6, %c0_7] : memref<8x128xf32, #tpu.memory_space<vmem>>, vector<1x128xf32>
    %cst_8 = arith.constant dense<0.000000e+00> : vector<128xf32>
    %8 = vector.multi_reduction <add>, %2, %cst_8 [0] : vector<256x128xf32> to vector<128xf32>
    %9 = vector.shape_cast %8 : vector<128xf32> to vector<1x128xf32>
    %10 = arith.addf %7, %9 : vector<1x128xf32>
    %c0_9 = arith.constant 0 : index
    %c0_10 = arith.constant 0 : index
    %11 = vector.load %arg4[%c0_9, %c0_10] : memref<8x128xf32, #tpu.memory_space<vmem>>, vector<1x128xf32>
    tpu.vector_store %arg4[%c0_9, %c0_10], %10 {strides = array<i32>} : memref<8x128xf32, #tpu.memory_space<vmem>>, vector<1x128xf32>,
    %c1 = arith.constant 1 : index
    %c0_11 = arith.constant 0 : index
    %12 = vector.load %arg4[%c1, %c0_11] : memref<8x128xf32, #tpu.memory_space<vmem>>, vector<1x128xf32>
    %13 = arith.mulf %2, %2 : vector<256x128xf32>
    %cst_12 = arith.constant dense<0.000000e+00> : vector<128xf32>
    %14 = vector.multi_reduction <add>, %13, %cst_12 [0] : vector<256x128xf32> to vector<128xf32>
    %15 = vector.shape_cast %14 : vector<128xf32> to vector<1x128xf32>
    %16 = arith.addf %12, %15 : vector<1x128xf32>
    %c1_13 = arith.constant 1 : index
    %c0_14 = arith.constant 0 : index
    %17 = vector.load %arg4[%c1_13, %c0_14] : memref<8x128xf32, #tpu.memory_space<vmem>>, vector<1x128xf32>
    tpu.vector_store %arg4[%c1_13, %c0_14], %16 {strides = array<i32>} : memref<8x128xf32, #tpu.memory_space<vmem>>, vector<1x128xf32>,
    return
  }
  func.func @transform_0(%arg0: i32) -> (i32, i32) {
    %c0_i32 = arith.constant 0 : i32
    %c0_i32_0 = arith.constant 0 : i32
    return %arg0, %c0_i32 : i32, i32
  }
  func.func @transform_1(%arg0: i32) -> (i32, i32) {
    %c0_i32 = arith.constant 0 : i32
    %c0_i32_0 = arith.constant 0 : i32
    %c0_i32_1 = arith.constant 0 : i32
    return %c0_i32, %c0_i32_0 : i32, i32
  }
  func.func @transform_2(%arg0: i32) -> (i32, i32) {
    %c0_i32 = arith.constant 0 : i32
    %c0_i32_0 = arith.constant 0 : i32
    return %arg0, %c0_i32 : i32, i32
  }
  func.func @transform_3(%arg0: i32) -> (i32, i32) {
    %c0_i32 = arith.constant 0 : i32
    %c0_i32_0 = arith.constant 0 : i32
    %c0_i32_1 = arith.constant 0 : i32
    return %c0_i32, %c0_i32_0 : i32, i32
  }
}

module attributes {stable_mosaic.version = 11 : i64} {
  func.func @_bn_act_kernel(%arg0: i32, %arg1: memref<256x128xf32, #tpu.memory_space<vmem>>, %arg2: memref<8x128xf32, #tpu.memory_space<vmem>>, %arg3: memref<8x128xf32, #tpu.memory_space<vmem>>, %arg4: memref<256x128xf32, #tpu.memory_space<vmem>>) attributes {dimension_semantics = [#tpu.dimension_semantics<parallel>], iteration_bounds = array<i64: 2>, scalar_prefetch = 0 : i64, scratch_operands = 0 : i64, tpu.core_type = #tpu.core_type<tc>, window_params = [{transform_indices = @transform_0, window_bounds = array<i64: 256, 128>}, {pipeline_mode = #tpu.pipeline_mode<synchronous>, transform_indices = @transform_1, window_bounds = array<i64: 8, 128>}, {pipeline_mode = #tpu.pipeline_mode<synchronous>, transform_indices = @transform_2, window_bounds = array<i64: 8, 128>}, {transform_indices = @transform_3, window_bounds = array<i64: 256, 128>}]} {
    %c0 = arith.constant 0 : index
    %c0_0 = arith.constant 0 : index
    %0 = vector.load %arg1[%c0, %c0_0] : memref<256x128xf32, #tpu.memory_space<vmem>>, vector<256x128xf32>
    %c0_1 = arith.constant 0 : index
    %c0_2 = arith.constant 0 : index
    %1 = vector.load %arg2[%c0_1, %c0_2] : memref<8x128xf32, #tpu.memory_space<vmem>>, vector<1x128xf32>
    %2 = vector.broadcast %1 : vector<1x128xf32> to vector<256x128xf32>
    %3 = arith.mulf %0, %2 : vector<256x128xf32>
    %c0_3 = arith.constant 0 : index
    %c0_4 = arith.constant 0 : index
    %4 = vector.load %arg3[%c0_3, %c0_4] : memref<8x128xf32, #tpu.memory_space<vmem>>, vector<1x128xf32>
    %5 = vector.broadcast %4 : vector<1x128xf32> to vector<256x128xf32>
    %6 = arith.addf %3, %5 : vector<256x128xf32>
    %cst = arith.constant 0.000000e+00 : f32
    %7 = vector.broadcast %cst : f32 to vector<256x128xf32>
    %8 = arith.cmpf oge, %6, %7 : vector<256x128xf32>
    %cst_5 = arith.constant 1.000000e-01 : f32
    %9 = vector.broadcast %cst_5 : f32 to vector<256x128xf32>
    %10 = arith.mulf %9, %6 : vector<256x128xf32>
    %11 = arith.select %8, %6, %10 : vector<256x128xi1>, vector<256x128xf32>
    %c0_6 = arith.constant 0 : index
    %c0_7 = arith.constant 0 : index
    %12 = vector.load %arg4[%c0_6, %c0_7] : memref<256x128xf32, #tpu.memory_space<vmem>>, vector<256x128xf32>
    tpu.vector_store %arg4[%c0_6, %c0_7], %11 {strides = array<i32>} : memref<256x128xf32, #tpu.memory_space<vmem>>, vector<256x128xf32>,
    return
  }
  func.func @transform_0(%arg0: i32) -> (i32, i32) {
    %c0_i32 = arith.constant 0 : i32
    %c0_i32_0 = arith.constant 0 : i32
    return %arg0, %c0_i32 : i32, i32
  }
  func.func @transform_1(%arg0: i32) -> (i32, i32) {
    %c0_i32 = arith.constant 0 : i32
    %c0_i32_0 = arith.constant 0 : i32
    %c0_i32_1 = arith.constant 0 : i32
    return %c0_i32, %c0_i32_0 : i32, i32
  }
  func.func @transform_2(%arg0: i32) -> (i32, i32) {
    %c0_i32 = arith.constant 0 : i32
    %c0_i32_0 = arith.constant 0 : i32
    %c0_i32_1 = arith.constant 0 : i32
    return %c0_i32, %c0_i32_0 : i32, i32
  }
  func.func @transform_3(%arg0: i32) -> (i32, i32) {
    %c0_i32 = arith.constant 0 : i32
    %c0_i32_0 = arith.constant 0 : i32
    return %arg0, %c0_i32 : i32, i32
  }
}

</mosaic_0001>

<bundles_post_ra>
// kernel: _lambda_.3
= control target key start
LH: loop header
LB: loop body
LE: loop exit
PB: predicated region body
PF: predicated region fallthrough
CT: control target
= control target key end

     0   :  { %s513_s12 = smov 0   ;;  %s729_s0 = inlined_call_operand.vmem [shape: f32[512,128], index: 0, kind: input, shape index: {}, may-alias: {0,3}]   ;;  %s730_s1 = inlined_call_operand.vmem [shape: f32[8,128], index: 1, kind: input, shape index: {}]   ;;  %s731_s2 = inlined_call_operand.vmem [shape: f32[8,128], index: 2, kind: input, shape index: {}]   ;;  %s732_s3 = inlined_call_operand.vmem [shape: f32[512,128], index: 3, kind: output, shape index: {}, may-alias: {0,3}]  }
   0x1 LB: > { %s464_s13 = sadd.s32 4294967295, %s491_s12   ;;  %p468_p0 = scmp.ge.s32.totalorder %s491_s12, 1  ;;  %s491_s12 = sphi %s513_s12, %s13_s12  }
   0x2   : > { %p138_p1 = scmp.lt.s32.totalorder %s491_s12, 3 }
   0x4   : > { %p139_p2 = pnand %p468_p0, %p138_p1 }
   0x5   : > { %s469_s14 = sshll.u32 (!%p139_p2), %s464_s13, 5  ;;  %v527_v0 = vld [vmem:[%s730_s1] ss:$0 sm:$0xff] (!%p139_p2) }
   0x6   : > { %142 = sbr.rel (%p139_p2) target bundleno = 61 (0x3d), region = 32  ;;  %p163_p3 = scmp.lt.s32.totalorder (!%p139_p2), %s469_s14, 63  ;;  %v539_v1 = vld [vmem:[%s731_s2] ss:$0 sm:$0xff] (!%p139_p2) }
   0xd   : > { %s734_s14 = smov (!%p163_p3, %s469_s14), 63 }
   0xe   : > { %s470_s15 = sshll.u32 %s734_s14, 3 }
   0xf   : > { %s534_s20 = scalar_lea.vmem %s729_s0, %s470_s15  ;;  %s576_s25 = scalar_lea.vmem %s732_s3, %s470_s15 }
  0x10   : > { %v174_v2 = vld [vmem:[%s534_s20] sm:$0xff]  ;;  %v175_v3 = vld [vmem:[%s534_s20 + $0x8] sm:$0xff]  ;;  %v176_v4 = vld [vmem:[%s534_s20 + $0x10] sm:$0xff] }
  0x11   : > { %v177_v5 = vld [vmem:[%s534_s20 + $0x18] sm:$0xff]  ;;  %v178_v6 = vld [vmem:[%s534_s20 + $0x20] sm:$0xff]  ;;  %v179_v7 = vld [vmem:[%s534_s20 + $0x28] sm:$0xff]  ;;  %v211_v8 = vmul.f32 %v527_v0, %v174_v2  ;;  %v212_v9 = vmul.f32 %v527_v0, %v175_v3  ;;  %v213_v10 = vmul.f32 %v527_v0, %v176_v4 }
  0x12   : > { %v180_v11 = vld [vmem:[%s534_s20 + $0x30] sm:$0xff]  ;;  %v181_v12 = vld [vmem:[%s534_s20 + $0x38] sm:$0xff]  ;;  %v182_v13 = vld [vmem:[%s534_s20 + $0x40] sm:$0xff]  ;;  %v214_v14 = vmul.f32 %v527_v0, %v177_v5  ;;  %v215_v15 = vmul.f32 %v527_v0, %v178_v6  ;;  %v216_v16 = vmul.f32 %v527_v0, %v179_v7 }
  0x13   : > { %v183_v17 = vld [vmem:[%s534_s20 + $0x48] sm:$0xff]  ;;  %v248_v18 = vadd.f32 %v539_v1, %v211_v8  ;;  %v249_v19 = vadd.f32 %v539_v1, %v212_v9  ;;  %v250_v20 = vadd.f32 %v539_v1, %v213_v10  ;;  %v217_v21 = vmul.f32 %v527_v0, %v180_v11  ;;  %v184_v29 = vld [vmem:[%s534_s20 + $0x50] sm:$0xff]  ;;  %v185_v36 = vld [vmem:[%s534_s20 + $0x58] sm:$0xff] }
  0x14   : > { %v251_v22 = vadd.f32 %v539_v1, %v214_v14  ;;  %v252_v23 = vadd.f32 %v539_v1, %v215_v15  ;;  %v253_v24 = vadd.f32 %v539_v1, %v216_v16  ;;  %v218_v25 = vmul.f32 %v527_v0, %v181_v12  ;;  %v186_v37 = vld [vmem:[%s534_s20 + $0x60] sm:$0xff]  ;;  %v187_v38 = vld [vmem:[%s534_s20 + $0x68] sm:$0xff]  ;;  %v188_v39 = vld [vmem:[%s534_s20 + $0x70] sm:$0xff] }
  0x15   : > { %vm280_vm0 = vcmp.ge.f32.partialorder %v248_v18, 0.0  ;;  %v312_v26 = vmul.f32 0.1, %v248_v18  ;;  %v254_v27 = vadd.f32 %v539_v1, %v217_v21  ;;  %v219_v28 = vmul.f32 %v527_v0, %v182_v13  ;;  %v189_v40 = vld [vmem:[%s534_s20 + $0x78] sm:$0xff]  ;;  %v584_v41 = vld [vmem:[%s534_s20 + $0x80] sm:$0xff]  ;;  %v587_v42 = vld [vmem:[%s534_s20 + $0x88] sm:$0xff] }
  0x16   : > { %vm281_vm1 = vcmp.ge.f32.partialorder %v249_v19, 0.0  ;;  %v313_v30 = vmul.f32 0.1, %v249_v19  ;;  %v255_v31 = vadd.f32 %v539_v1, %v218_v25  ;;  %v220_v32 = vmul.f32 %v527_v0, %v183_v17  ;;  %v590_v43 = vld [vmem:[%s534_s20 + $0x90] sm:$0xff]  ;;  %v593_v44 = vld [vmem:[%s534_s20 + $0x98] sm:$0xff]  ;;  %v596_v45 = vld [vmem:[%s534_s20 + $0xa0] sm:$0xff] }
  0x17   : > { %v344_v33 = vsel %vm280_vm0, %v248_v18, %v312_v26  ;;  %vm282_vm2 = vcmp.ge.f32.partialorder %v250_v20, 0.0  ;;  %v314_v34 = vmul.f32 0.1, %v250_v20  ;;  %v256_v35 = vadd.f32 %v539_v1, %v219_v28  ;;  %v599_v46 = vld [vmem:[%s534_s20 + $0xa8] sm:$0xff]  ;;  %v602_v47 = vld [vmem:[%s534_s20 + $0xb0] sm:$0xff]  ;;  %v605_v48 = vld [vmem:[%s534_s20 + $0xb8] sm:$0xff] }
  0x18   : > { %v608_v49 = vld [vmem:[%s534_s20 + $0xc0] sm:$0xff]  ;;  %v611_v50 = vld [vmem:[%s534_s20 + $0xc8] sm:$0xff]  ;;  %v614_v51 = vld [vmem:[%s534_s20 + $0xd0] sm:$0xff]  ;;  %v345_v52 = vsel %vm281_vm1, %v249_v19, %v313_v30  ;;  %vm283_vm3 = vcmp.ge.f32.partialorder %v251_v22, 0.0  ;;  %v315_v53 = vmul.f32 0.1, %v251_v22  ;;  %v257_v54 = vadd.f32 %v539_v1, %v220_v32 }
  0x19   : > { %v619_v55 = vld [vmem:[%s534_s20 + $0xd8] sm:$0xff]  ;;  %v622_v56 = vld [vmem:[%s534_s20 + $0xe0] sm:$0xff]  ;;  %v625_v57 = vld [vmem:[%s534_s20 + $0xe8] sm:$0xff]  ;;  %v346_v58 = vsel %vm282_vm2, %v250_v20, %v314_v34  ;;  %vm284_vm4 = vcmp.ge.f32.partialorder %v252_v23, 0.0  ;;  %v316_v59 = vmul.f32 0.1, %v252_v23  ;;  %v221_v60 = vmul.f32 %v527_v0, %v184_v29 }
  0x1a   : > { %v630_v61 = vld [vmem:[%s534_s20 + $0xf0] sm:$0xff]  ;;  %v633_v62 = vld [vmem:[%s534_s20 + $0xf8] sm:$0xff]  ;;  %v347_v63 = vsel %vm283_vm3, %v251_v22, %v315_v53  ;;  %vm285_vm5 = vcmp.ge.f32.partialorder %v253_v24, 0.0  ;;  %v317_v2 = vmul.f32 0.1, %v253_v24  ;;  %vm286_vm6 = vcmp.ge.f32.partialorder %v254_v27, 0.0 }
  0x1b   : > { %376 = vst [vmem:[%s576_s25] sm:$0xff] %v344_v33  ;;  %377 = vst [vmem:[%s576_s25 + $0x8] sm:$0xff] %v345_v52  ;;  %v348_v3 = vsel %vm284_vm4, %v252_v23, %v316_v59  ;;  %v318_v4 = vmul.f32 0.1, %v254_v27  ;;  %vm287_vm7 = vcmp.ge.f32.partialorder %v255_v31, 0.0  ;;  %v319_v5 = vmul.f32 0.1, %v255_v31 }
  0x1c   : > { %378 = vst [vmem:[%s576_s25 + $0x10] sm:$0xff] %v346_v58  ;;  %379 = vst [vmem:[%s576_s25 + $0x18] sm:$0xff] %v347_v63  ;;  %v349_v6 = vsel %vm285_vm5, %v253_v24, %v317_v2  ;;  %vm288_vm8 = vcmp.ge.f32.partialorder %v256_v35, 0.0  ;;  %v320_v7 = vmul.f32 0.1, %v256_v35  ;;  %vm289_vm9 = vcmp.ge.f32.partialorder %v257_v54, 0.0 }
  0x1d   : > { %380 = vst [vmem:[%s576_s25 + $0x20] sm:$0xff] %v348_v3  ;;  %381 = vst [vmem:[%s576_s25 + $0x28] sm:$0xff] %v349_v6  ;;  %v350_v8 = vsel %vm286_vm6, %v254_v27, %v318_v4  ;;  %v351_v9 = vsel %vm287_vm7, %v255_v31, %v319_v5  ;;  %v321_v10 = vmul.f32 0.1, %v257_v54  ;;  %v258_v11 = vadd.f32 %v539_v1, %v221_v60 }
  0x1e   : > { %382 = vst [vmem:[%s576_s25 + $0x30] sm:$0xff] %v350_v8  ;;  %383 = vst [vmem:[%s576_s25 + $0x38] sm:$0xff] %v351_v9  ;;  %v352_v12 = vsel %vm288_vm8, %v256_v35, %v320_v7  ;;  %v222_v13 = vmul.f32 %v527_v0, %v185_v36  ;;  %v223_v14 = vmul.f32 %v527_v0, %v186_v37 }
  0x1f   : > { %v224_v15 = vmul.f32 %v527_v0, %v187_v38  ;;  %384 = vst [vmem:[%s576_s25 + $0x40] sm:$0xff] %v352_v12  ;;  %v353_v16 = vsel %vm289_vm9, %v257_v54, %v321_v10  ;;  %vm290_vm10 = vcmp.ge.f32.partialorder %v258_v11, 0.0  ;;  %v322_v17 = vmul.f32 0.1, %v258_v11 }
  0x20   : > { %v225_v18 = vmul.f32 %v527_v0, %v188_v39  ;;  %385 = vst [vmem:[%s576_s25 + $0x48] sm:$0xff] %v353_v16  ;;  %v259_v19 = vadd.f32 %v539_v1, %v222_v13  ;;  %v260_v20 = vadd.f32 %v539_v1, %v223_v14  ;;  %v226_v22 = vmul.f32 %v527_v0, %v189_v40 }
  0x21   : > { %v261_v21 = vadd.f32 %v539_v1, %v224_v15  ;;  %v354_v23 = vsel %vm290_vm10, %v258_v11, %v322_v17  ;;  %v227_v25 = vmul.f32 %v527_v0, %v584_v41  ;;  %v228_v26 = vmul.f32 %v527_v0, %v587_v42 }
  0x22   : > { %v262_v24 = vadd.f32 %v539_v1, %v225_v18  ;;  %386 = vst [vmem:[%s576_s25 + $0x50] sm:$0xff] %v354_v23  ;;  %vm291_vm11 = vcmp.ge.f32.partialorder %v259_v19, 0.0  ;;  %v323_v27 = vmul.f32 0.1, %v259_v19  ;;  %vm292_vm12 = vcmp.ge.f32.partialorder %v260_v20, 0.0 }
  0x23   : > { %v324_v28 = vmul.f32 0.1, %v260_v20  ;;  %vm293_vm13 = vcmp.ge.f32.partialorder %v261_v21, 0.0  ;;  %v325_v29 = vmul.f32 0.1, %v261_v21  ;;  %v263_v33 = vadd.f32 %v539_v1, %v226_v22 }
  0x24   : > { %vm294_vm14 = vcmp.ge.f32.partialorder %v262_v24, 0.0  ;;  %v326_v30 = vmul.f32 0.1, %v262_v24  ;;  %v355_v31 = vsel %vm291_vm11, %v259_v19, %v323_v27  ;;  %v264_v34 = vadd.f32 %v539_v1, %v227_v25 }
  0x25   : > { %v356_v32 = vsel %vm292_vm12, %v260_v20, %v324_v28  ;;  %387 = vst [vmem:[%s576_s25 + $0x58] sm:$0xff] %v355_v31  ;;  %v357_v35 = vsel %vm293_vm13, %v261_v21, %v325_v29  ;;  %v265_v37 = vadd.f32 %v539_v1, %v228_v26  ;;  %v229_v38 = vmul.f32 %v527_v0, %v590_v43 }
  0x26   : > { %388 = vst [vmem:[%s576_s25 + $0x60] sm:$0xff] %v356_v32  ;;  %v358_v36 = vsel %vm294_vm14, %v262_v24, %v326_v30  ;;  %389 = vst [vmem:[%s576_s25 + $0x68] sm:$0xff] %v357_v35  ;;  %vm295_vm15 = vcmp.ge.f32.partialorder %v263_v33, 0.0  ;;  %v327_v39 = vmul.f32 0.1, %v263_v33  ;;  %vm296_vm0 = vcmp.ge.f32.partialorder %v264_v34, 0.0 }
  0x27   : > { %390 = vst [vmem:[%s576_s25 + $0x70] sm:$0xff] %v358_v36  ;;  %v328_v40 = vmul.f32 0.1, %v264_v34  ;;  %vm297_vm1 = vcmp.ge.f32.partialorder %v265_v37, 0.0  ;;  %v329_v41 = vmul.f32 0.1, %v265_v37  ;;  %v266_v42 = vadd.f32 %v539_v1, %v229_v38 }
  0x28   : > { %v230_v52 = vmul.f32 %v527_v0, %v593_v44  ;;  %v359_v53 = vsel %vm295_vm15, %v263_v33, %v327_v39  ;;  %v231_v43 = vmul.f32 %v527_v0, %v596_v45  ;;  %v232_v58 = vmul.f32 %v527_v0, %v599_v46 }
  0x29   : > { %v360_v54 = vsel %vm296_vm0, %v264_v34, %v328_v40  ;;  %391 = vst [vmem:[%s576_s25 + $0x78] sm:$0xff] %v359_v53  ;;  %v361_v59 = vsel %vm297_vm1, %v265_v37, %v329_v41  ;;  %vm298_vm2 = vcmp.ge.f32.partialorder %v266_v42, 0.0  ;;  %v330_v60 = vmul.f32 0.1, %v266_v42 }
  0x2a   : > { %392 = vst [vmem:[%s576_s25 + $0x80] sm:$0xff] %v360_v54  ;;  %v267_v63 = vadd.f32 %v539_v1, %v230_v52  ;;  %393 = vst [vmem:[%s576_s25 + $0x88] sm:$0xff] %v361_v59  ;;  %v268_v2 = vadd.f32 %v539_v1, %v231_v43  ;;  %v269_v44 = vadd.f32 %v539_v1, %v232_v58 }
  0x2b   : > { %v233_v45 = vmul.f32 %v527_v0, %v602_v47  ;;  %v234_v46 = vmul.f32 %v527_v0, %v605_v48  ;;  %v362_v3 = vsel %vm298_vm2, %v266_v42, %v330_v60  ;;  %v235_v5 = vmul.f32 %v527_v0, %v608_v49 }
  0x2c   : > { %vm299_vm3 = vcmp.ge.f32.partialorder %v267_v63, 0.0  ;;  %v331_v4 = vmul.f32 0.1, %v267_v63  ;;  %394 = vst [vmem:[%s576_s25 + $0x90] sm:$0xff] %v362_v3  ;;  %vm300_vm4 = vcmp.ge.f32.partialorder %v268_v2, 0.0  ;;  %vm301_vm5 = vcmp.ge.f32.partialorder %v269_v44, 0.0 }
  0x2d   : > { %v332_v6 = vmul.f32 0.1, %v268_v2  ;;  %v333_v7 = vmul.f32 0.1, %v269_v44  ;;  %v270_v9 = vadd.f32 %v539_v1, %v233_v45  ;;  %v271_v47 = vadd.f32 %v539_v1, %v234_v46 }
  0x2e   : > { %v363_v8 = vsel %vm299_vm3, %v267_v63, %v331_v4  ;;  %v272_v48 = vadd.f32 %v539_v1, %v235_v5  ;;  %v236_v12 = vmul.f32 %v527_v0, %v611_v50  ;;  %v237_v49 = vmul.f32 %v527_v0, %v614_v51 }
  0x2f   : > { %395 = vst [vmem:[%s576_s25 + $0x98] sm:$0xff] %v363_v8  ;;  %v364_v10 = vsel %vm300_vm4, %v268_v2, %v332_v6  ;;  %v365_v11 = vsel %vm301_vm5, %v269_v44, %v333_v7  ;;  %vm302_vm6 = vcmp.ge.f32.partialorder %v270_v9, 0.0  ;;  %v334_v13 = vmul.f32 0.1, %v270_v9 }
  0x30   : > { %396 = vst [vmem:[%s576_s25 + $0xa0] sm:$0xff] %v364_v10  ;;  %397 = vst [vmem:[%s576_s25 + $0xa8] sm:$0xff] %v365_v11  ;;  %vm303_vm7 = vcmp.ge.f32.partialorder %v271_v47, 0.0  ;;  %v335_v14 = vmul.f32 0.1, %v271_v47  ;;  %vm304_vm8 = vcmp.ge.f32.partialorder %v272_v48, 0.0  ;;  %v273_v16 = vadd.f32 %v539_v1, %v236_v12 }
  0x31   : > { %v336_v15 = vmul.f32 0.1, %v272_v48  ;;  %v274_v17 = vadd.f32 %v539_v1, %v237_v49  ;;  %v366_v18 = vsel %vm302_vm6, %v270_v9, %v334_v13  ;;  %v238_v19 = vmul.f32 %v527_v0, %v619_v55 }
  0x32   : > { %v367_v50 = vsel %vm303_vm7, %v271_v47, %v335_v14  ;;  %v239_v51 = vmul.f32 %v527_v0, %v622_v56  ;;  %398 = vst [vmem:[%s576_s25 + $0xb0] sm:$0xff] %v366_v18  ;;  %vm305_vm9 = vcmp.ge.f32.partialorder %v273_v16, 0.0  ;;  %v337_v21 = vmul.f32 0.1, %v273_v16 }
  0x33   : > { %399 = vst [vmem:[%s576_s25 + $0xb8] sm:$0xff] %v367_v50  ;;  %v368_v20 = vsel %vm304_vm8, %v272_v48, %v336_v15  ;;  %vm306_vm10 = vcmp.ge.f32.partialorder %v274_v17, 0.0  ;;  %v338_v22 = vmul.f32 0.1, %v274_v17  ;;  %v275_v23 = vadd.f32 %v539_v1, %v238_v19 }
  0x34   : > { %400 = vst [vmem:[%s576_s25 + $0xc0] sm:$0xff] %v368_v20  ;;  %v276_v24 = vadd.f32 %v539_v1, %v239_v51  ;;  %v240_v55 = vmul.f32 %v527_v0, %v625_v57  ;;  %v369_v25 = vsel %vm305_vm9, %v273_v16, %v337_v21  ;;  %v241_v56 = vmul.f32 %v527_v0, %v630_v61 }
  0x35   : > { %v242_v26 = vmul.f32 %v527_v0, %v633_v62  ;;  %401 = vst [vmem:[%s576_s25 + $0xc8] sm:$0xff] %v369_v25  ;;  %v370_v27 = vsel %vm306_vm10, %v274_v17, %v338_v22  ;;  %vm307_vm11 = vcmp.ge.f32.partialorder %v275_v23, 0.0  ;;  %v339_v28 = vmul.f32 0.1, %v275_v23 }
  0x36   : > { %vm308_vm12 = vcmp.ge.f32.partialorder %v276_v24, 0.0  ;;  %402 = vst [vmem:[%s576_s25 + $0xd0] sm:$0xff] %v370_v27  ;;  %v340_v29 = vmul.f32 0.1, %v276_v24  ;;  %v277_v30 = vadd.f32 %v539_v1, %v240_v55  ;;  %v278_v57 = vadd.f32 %v539_v1, %v241_v56 }
  0x37   : > { %v279_v31 = vadd.f32 %v539_v1, %v242_v26  ;;  %v371_v61 = vsel %vm307_vm11, %v275_v23, %v339_v28 }
  0x38   : > { %403 = vst [vmem:[%s576_s25 + $0xd8] sm:$0xff] %v371_v61  ;;  %v372_v0 = vsel %vm308_vm12, %v276_v24, %v340_v29  ;;  %vm309_vm13 = vcmp.ge.f32.partialorder %v277_v30, 0.0  ;;  %v341_v62 = vmul.f32 0.1, %v277_v30  ;;  %vm310_vm14 = vcmp.ge.f32.partialorder %v278_v57, 0.0 }
  0x39   : > { %404 = vst [vmem:[%s576_s25 + $0xe0] sm:$0xff] %v372_v0  ;;  %v342_v32 = vmul.f32 0.1, %v278_v57  ;;  %vm311_vm15 = vcmp.ge.f32.partialorder %v279_v31, 0.0  ;;  %v343_v33 = vmul.f32 0.1, %v279_v31 }
  0x3a   : > { %v373_v34 = vsel %vm309_vm13, %v277_v30, %v341_v62 }
  0x3b   : > { %405 = vst [vmem:[%s576_s25 + $0xe8] sm:$0xff] %v373_v34  ;;  %v374_v35 = vsel %vm310_vm14, %v278_v57, %v342_v32  ;;  %v375_v36 = vsel %vm311_vm15, %v279_v31, %v343_v33 }
  0x3c   : > { %406 = vst [vmem:[%s576_s25 + $0xf0] sm:$0xff] %v374_v35  ;;  %407 = vst [vmem:[%s576_s25 + $0xf8] sm:$0xff] %v375_v36 }
  0x3d PF: > { %s13_s12 = sadd.s32 1, %s491_s12  }
  0x3e   : > { %p10_p4 = scmp.ge.s32.totalorder %s13_s12, 4  }
  0x40   :  { %12 = sbr.rel (!%p10_p4) target bundleno = 1 (0x1), region = 62 }

// kernel: _lambda_.2
= control target key start
LH: loop header
LB: loop body
LE: loop exit
PB: predicated region body
PF: predicated region fallthrough
CT: control target
= control target key end

     0   :  { %s882_s12 = smov 0   ;;  %s1179_s0 = inlined_call_operand.vmem [shape: f32[512,128], index: 0, kind: input, shape index: {}]   ;;  %s1180_s1 = inlined_call_operand.vmem [shape: f32[128,128], index: 1, kind: input, shape index: {}]   ;;  %s1181_s2 = inlined_call_operand.vmem [shape: f32[512,128], index: 2, kind: output, shape index: {0}]   ;;  %s1182_s3 = inlined_call_operand.vmem [shape: f32[8,128], index: 3, kind: output, shape index: {1}]  }
   0x1 LB: > { %s656_s13 = sadd.s32 4294967295, %s859_s12   ;;  %p660_p0 = scmp.ge.s32.totalorder %s859_s12, 1  ;;  %s859_s12 = sphi %s882_s12, %s14_s12  }
   0x2   : > { %p136_p1 = scmp.lt.s32.totalorder %s859_s12, 3 }
   0x4   : > { %p137_p2 = pnand %p660_p0, %p136_p1 }
   0x5   : > { %v204_v0 = vld [vmem:[%s1180_s1] sm:$0xff] (!%p137_p2)  ;;  %v205_v1 = vld [vmem:[%s1180_s1 + $0x8] sm:$0xff] (!%p137_p2)  ;;  %v206_v2 = vld [vmem:[%s1180_s1 + $0x10] sm:$0xff] (!%p137_p2)  ;;  %s661_s20 = sshll.u32 (!%p137_p2), %s656_s13, 5  ;;  %p665_p4 = scmp.ne.s32.totalorder (!%p137_p2), %s656_s13, 0 }
   0x6   : > { %140 = sbr.rel (%p137_p2) target bundleno = 362 (0x16a), region = 28  ;;  %v796_v3 = vpack.c.bf16 (!%p137_p2), %v205_v1, %v204_v0  ;;  %v207_v4 = vld [vmem:[%s1180_s1 + $0x18] sm:$0xff] (!%p137_p2)  ;;  %p161_p3 = scmp.lt.s32.totalorder (!%p137_p2), %s661_s20, 63  ;;  %v208_v6 = vld [vmem:[%s1180_s1 + $0x20] sm:$0xff] (!%p137_p2)  ;;  %v209_v7 = vld [vmem:[%s1180_s1 + $0x28] sm:$0xff] (!%p137_p2) }
   0x7   : > { %v800_v5 = vpack.c.bf16 (!%p137_p2), %v207_v4, %v206_v2  ;;  %v804_v8 = vpack.c.bf16 (!%p137_p2), %v209_v7, %v208_v6  ;;  %v210_v9 = vld [vmem:[%s1180_s1 + $0x30] sm:$0xff] (!%p137_p2)  ;;  %v211_v10 = vld [vmem:[%s1180_s1 + $0x38] sm:$0xff] (!%p137_p2)  ;;  %v212_v14 = vld [vmem:[%s1180_s1 + $0x40] sm:$0xff] (!%p137_p2) }
   0x8   : > { %797 = vmatprep.subr.bf16.mxu0 (!%p137_p2), %v796_v3  ;;  %828 = vmatprep.subr.bf16.mxu1 (!%p137_p2), %v796_v3  ;;  %v808_v13 = vpack.c.bf16 (!%p137_p2), %v211_v10, %v210_v9  ;;  %v213_v15 = vld [vmem:[%s1180_s1 + $0x48] sm:$0xff] (!%p137_p2)  ;;  %v214_v17 = vld [vmem:[%s1180_s1 + $0x50] sm:$0xff] (!%p137_p2)  ;;  %v215_v18 = vld [vmem:[%s1180_s1 + $0x58] sm:$0xff] (!%p137_p2) }
   0x9   : > { %799 = vmatpush3.bf16.msra.mxu0 (!%p137_p2), %v796_v3  ;;  %836 = vmatpush3.bf16.msra.mxu1 (!%p137_p2), %v796_v3  ;;  %v812_v16 = vpack.c.bf16 (!%p137_p2), %v213_v15, %v212_v14  ;;  %v816_v19 = vpack.c.bf16 (!%p137_p2), %v215_v18, %v214_v17  ;;  %v216_v20 = vld [vmem:[%s1180_s1 + $0x60] sm:$0xff] (!%p137_p2)  ;;  %v217_v21 = vld [vmem:[%s1180_s1 + $0x68] sm:$0xff] (!%p137_p2)  ;;  %v218_v23 = vld [vmem:[%s1180_s1 + $0x70] sm:$0xff] (!%p137_p2) }
   0xa   : > { %801 = vmatprep.subr.bf16.mxu0 (!%p137_p2), %v800_v5  ;;  %829 = vmatprep.subr.bf16.mxu1 (!%p137_p2), %v800_v5  ;;  %v820_v22 = vpack.c.bf16 (!%p137_p2), %v217_v21, %v216_v20  ;;  %v219_v24 = vld [vmem:[%s1180_s1 + $0x78] sm:$0xff] (!%p137_p2) }
   0xb   : > { %v824_v25 = vpack.c.bf16 (!%p137_p2), %v219_v24, %v218_v23 }
   0xd   : > { %s1184_s20 = smov (!%p161_p3, %s661_s20), 63  ;;  %803 = vmatpush3.bf16.msra.mxu0 %v800_v5  ;;  %837 = vmatpush3.bf16.msra.mxu1 %v800_v5  ;;  %v861_v24 = vmov (!%p665_p4), 0.0  }
   0xe   : > { %s662_s27 = sshll.u32 %s1184_s20, 3  ;;  %805 = vmatprep.subr.bf16.mxu0 %v804_v8  ;;  %830 = vmatprep.subr.bf16.mxu1 %v804_v8  ;;  %481 = vst [vmem:[%s1182_s3] sm:$0xff] (!%p665_p4), %v861_v24 }
   0xf   : > { %s924_s7 = scalar_lea.vmem %s1179_s0, %s662_s27  ;;  %s987_s30 = scalar_lea.vmem %s1181_s2, %s662_s27 }
  0x10   : > { %v172_v11 = vld [vmem:[%s924_s7] sm:$0xff]  ;;  %v173_v26 = vld [vmem:[%s924_s7 + $0x8] sm:$0xff]  ;;  %v174_v28 = vld [vmem:[%s924_s7 + $0x10] sm:$0xff] }
  0x11   : > { %v188_v12 = vld [vmem:[%s924_s7 + $0x80] sm:$0xff]  ;;  %748 = vmatprep.mubr.f32.mxu0 %v172_v11  ;;  %807 = vmatpush3.bf16.msra.mxu0 %v804_v8  ;;  %v189_v27 = vld [vmem:[%s924_s7 + $0x88] sm:$0xff]  ;;  %v190_v29 = vld [vmem:[%s924_s7 + $0x90] sm:$0xff] }
  0x12   : > { %772 = vmatprep.mubr.f32.mxu1 %v188_v12  ;;  %838 = vmatpush3.bf16.msra.mxu1 %v804_v8  ;;  %v175_v30 = vld [vmem:[%s924_s7 + $0x18] sm:$0xff]  ;;  %v176_v32 = vld [vmem:[%s924_s7 + $0x20] sm:$0xff]  ;;  %v177_v34 = vld [vmem:[%s924_s7 + $0x28] sm:$0xff] }
  0x13   : > { %809 = vmatprep.subr.bf16.mxu0 %v808_v13  ;;  %831 = vmatprep.subr.bf16.mxu1 %v808_v13  ;;  %v191_v31 = vld [vmem:[%s924_s7 + $0x98] sm:$0xff]  ;;  %v192_v33 = vld [vmem:[%s924_s7 + $0xa0] sm:$0xff]  ;;  %v193_v35 = vld [vmem:[%s924_s7 + $0xa8] sm:$0xff] }
  0x14   : > { %v178_v36 = vld [vmem:[%s924_s7 + $0x30] sm:$0xff]  ;;  %v179_v38 = vld [vmem:[%s924_s7 + $0x38] sm:$0xff]  ;;  %v180_v40 = vld [vmem:[%s924_s7 + $0x40] sm:$0xff] }
  0x15   : > { %811 = vmatpush3.bf16.msra.mxu0 %v808_v13  ;;  %v194_v37 = vld [vmem:[%s924_s7 + $0xb0] sm:$0xff]  ;;  %v195_v39 = vld [vmem:[%s924_s7 + $0xb8] sm:$0xff]  ;;  %v196_v41 = vld [vmem:[%s924_s7 + $0xc0] sm:$0xff] }
  0x16   : > { %839 = vmatpush3.bf16.msra.mxu1 %v808_v13  ;;  %813 = vmatprep.subr.bf16.mxu0 %v812_v16  ;;  %v181_v42 = vld [vmem:[%s924_s7 + $0x48] sm:$0xff]  ;;  %v182_v44 = vld [vmem:[%s924_s7 + $0x50] sm:$0xff]  ;;  %v183_v46 = vld [vmem:[%s924_s7 + $0x58] sm:$0xff] }
  0x17   : > { %832 = vmatprep.subr.bf16.mxu1 %v812_v16  ;;  %v197_v43 = vld [vmem:[%s924_s7 + $0xc8] sm:$0xff]  ;;  %v198_v45 = vld [vmem:[%s924_s7 + $0xd0] sm:$0xff]  ;;  %v199_v47 = vld [vmem:[%s924_s7 + $0xd8] sm:$0xff] }
  0x18   : > { %v184_v48 = vld [vmem:[%s924_s7 + $0x60] sm:$0xff]  ;;  %v185_v50 = vld [vmem:[%s924_s7 + $0x68] sm:$0xff]  ;;  %v186_v52 = vld [vmem:[%s924_s7 + $0x70] sm:$0xff] }
  0x19   : > { %815 = vmatpush3.bf16.msra.mxu0 %v812_v16  ;;  %v200_v49 = vld [vmem:[%s924_s7 + $0xe0] sm:$0xff]  ;;  %v201_v51 = vld [vmem:[%s924_s7 + $0xe8] sm:$0xff]  ;;  %v202_v53 = vld [vmem:[%s924_s7 + $0xf0] sm:$0xff] }
  0x1a   : > { %840 = vmatpush3.bf16.msra.mxu1 %v812_v16  ;;  %817 = vmatprep.subr.bf16.mxu0 %v816_v19  ;;  %v187_v54 = vld [vmem:[%s924_s7 + $0x78] sm:$0xff] }
  0x1b   : > { %833 = vmatprep.subr.bf16.mxu1 %v816_v19  ;;  %v203_v55 = vld [vmem:[%s924_s7 + $0xf8] sm:$0xff] }
  0x1d   : > { %819 = vmatpush3.bf16.msra.mxu0 %v816_v19 }
  0x1e   : > { %841 = vmatpush3.bf16.msra.mxu1 %v816_v19  ;;  %821 = vmatprep.subr.bf16.mxu0 %v820_v22 }
  0x1f   : > { %834 = vmatprep.subr.bf16.mxu1 %v820_v22 }
  0x21   : > { %823 = vmatpush3.bf16.msra.mxu0 %v820_v22 }
  0x22   : > { %842 = vmatpush3.bf16.msra.mxu1 %v820_v22  ;;  %825 = vmatprep.subr.bf16.mxu0 %v824_v25 }
  0x23   : > { %835 = vmatprep.subr.bf16.mxu1 %v824_v25 }
  0x25   : > { %827 = vmatpush3.bf16.msra.mxu0 %v824_v25 }
  0x26   : > { %843 = vmatpush3.bf16.msra.mxu1 %v824_v25 }
  0x28   : > { %749 = vmatmul.mubr.f32.vlgmr.msra.gmra.mrb[0].mxu0 %v173_v26 }
  0x29   : > { %773 = vmatmul.mubr.f32.vlgmr.msra.gmra.mrb[0].mxu1 %v189_v27  ;;  %751 = vmatprep.mubr.f32.mxu0 %v174_v28 }
  0x2a   : > { %775 = vmatprep.mubr.f32.mxu1 %v190_v29 }
  0x2c   : > { %752 = vmatmul.mubr.f32.gmra.mrb[2].mxu0 %v175_v30 }
  0x2d   : > { %776 = vmatmul.mubr.f32.gmra.mrb[2].mxu1 %v191_v31  ;;  %754 = vmatprep.mubr.f32.mxu0 %v176_v32 }
  0x2e   : > { %778 = vmatprep.mubr.f32.mxu1 %v192_v33 }
  0x30   : > { %755 = vmatmul.mubr.f32.gmra.mrb[4].mxu0 %v177_v34 }
  0x31   : > { %779 = vmatmul.mubr.f32.gmra.mrb[4].mxu1 %v193_v35  ;;  %757 = vmatprep.mubr.f32.mxu0 %v178_v36 }
  0x32   : > { %781 = vmatprep.mubr.f32.mxu1 %v194_v37 }
  0x34   : > { %758 = vmatmul.mubr.f32.gmra.mrb[6].mxu0 %v179_v38 }
  0x35   : > { %782 = vmatmul.mubr.f32.gmra.mrb[6].mxu1 %v195_v39  ;;  %760 = vmatprep.mubr.f32.mxu0 %v180_v40 }
  0x36   : > { %784 = vmatprep.mubr.f32.mxu1 %v196_v41 }
  0x38   : > { %761 = vmatmul.mubr.f32.gmra.mrb[8].mxu0 %v181_v42 }
  0x39   : > { %785 = vmatmul.mubr.f32.gmra.mrb[8].mxu1 %v197_v43  ;;  %763 = vmatprep.mubr.f32.mxu0 %v182_v44 }
  0x3a   : > { %787 = vmatprep.mubr.f32.mxu1 %v198_v45 }
  0x3c   : > { %764 = vmatmul.mubr.f32.gmra.mrb[10].mxu0 %v183_v46 }
  0x3d   : > { %788 = vmatmul.mubr.f32.gmra.mrb[10].mxu1 %v199_v47  ;;  %766 = vmatprep.mubr.f32.mxu0 %v184_v48 }
  0x3e   : > { %790 = vmatprep.mubr.f32.mxu1 %v200_v49 }
  0x40   : > { %767 = vmatmul.mubr.f32.gmra.mrb[12].mxu0 %v185_v50 }
  0x41   : > { %791 = vmatmul.mubr.f32.gmra.mrb[12].mxu1 %v201_v51  ;;  %769 = vmatprep.mubr.f32.mxu0 %v186_v52 }
  0x42   : > { %793 = vmatprep.mubr.f32.mxu1 %v202_v53 }
  0x44   : > { %770 = vmatmul.mubr.f32.gmra.mrb[14].mxu0 %v187_v54 }
  0x45   : > { %794 = vmatmul.mubr.f32.gmra.mrb[14].mxu1 %v203_v55 }
  0xfb   : > { %v989_v56 = vpop.f32.mrb[0].mxu0 }
  0xfc   : > { %v991_v57 = vpop.f32.mrb[0].mxu1  ;;  %446 = vst [vmem:[%s987_s30 + $0x8] sm:$0xff] %v989_v56  ;;  %v997_v58 = vpop.f32.mrb[1].mxu0 }
  0xfd   : > { %462 = vst [vmem:[%s987_s30 + $0x88] sm:$0xff] %v991_v57  ;;  %v999_v59 = vpop.f32.mrb[1].mxu1  ;;  %445 = vst [vmem:[%s987_s30] sm:$0xff] %v997_v58 }
  0xfe   : > { %461 = vst [vmem:[%s987_s30 + $0x80] sm:$0xff] %v999_v59 }
  0xff   : > { %v1005_v60 = vpop.f32.mrb[2].mxu0 }
 0x100   : > { %v1007_v61 = vpop.f32.mrb[2].mxu1  ;;  %448 = vst [vmem:[%s987_s30 + $0x18] sm:$0xff] %v1005_v60  ;;  %v1013_v62 = vpop.f32.mrb[3].mxu0 }
 0x101   : > { %464 = vst [vmem:[%s987_s30 + $0x98] sm:$0xff] %v1007_v61  ;;  %v1015_v63 = vpop.f32.mrb[3].mxu1  ;;  %447 = vst [vmem:[%s987_s30 + $0x10] sm:$0xff] %v1013_v62 }
 0x102   : > { %463 = vst [vmem:[%s987_s30 + $0x90] sm:$0xff] %v1015_v63 }
 0x103   : > { %v1021_v0 = vpop.f32.mrb[4].mxu0 }
 0x104   : > { %v1023_v1 = vpop.f32.mrb[4].mxu1  ;;  %450 = vst [vmem:[%s987_s30 + $0x28] sm:$0xff] %v1021_v0  ;;  %v306_v2 = vpop.f32.mrb[5].mxu0 }
 0x105   : > { %466 = vst [vmem:[%s987_s30 + $0xa8] sm:$0xff] %v1023_v1  ;;  %v1029_v3 = vpop.f32.mrb[5].mxu1  ;;  %449 = vst [vmem:[%s987_s30 + $0x20] sm:$0xff] %v306_v2 }
 0x106   : > { %465 = vst [vmem:[%s987_s30 + $0xa0] sm:$0xff] %v1029_v3 }
 0x107   : > { %v1034_v4 = vpop.f32.mrb[6].mxu0 }
 0x108   : > { %v1036_v5 = vpop.f32.mrb[6].mxu1  ;;  %452 = vst [vmem:[%s987_s30 + $0x38] sm:$0xff] %v1034_v4  ;;  %v316_v6 = vpop.f32.mrb[7].mxu0 }
 0x109   : > { %468 = vst [vmem:[%s987_s30 + $0xb8] sm:$0xff] %v1036_v5  ;;  %v1042_v7 = vpop.f32.mrb[7].mxu1  ;;  %451 = vst [vmem:[%s987_s30 + $0x30] sm:$0xff] %v316_v6 }
 0x10a   : > { %467 = vst [vmem:[%s987_s30 + $0xb0] sm:$0xff] %v1042_v7 }
 0x10b   : > { %v1047_v8 = vpop.f32.mrb[8].mxu0 }
 0x10c   : > { %v1049_v9 = vpop.f32.mrb[8].mxu1  ;;  %454 = vst [vmem:[%s987_s30 + $0x48] sm:$0xff] %v1047_v8  ;;  %v326_v10 = vpop.f32.mrb[9].mxu0 }
 0x10d   : > { %470 = vst [vmem:[%s987_s30 + $0xc8] sm:$0xff] %v1049_v9  ;;  %v1055_v11 = vpop.f32.mrb[9].mxu1  ;;  %453 = vst [vmem:[%s987_s30 + $0x40] sm:$0xff] %v326_v10 }
 0x10e   : > { %469 = vst [vmem:[%s987_s30 + $0xc0] sm:$0xff] %v1055_v11 }
 0x10f   : > { %v765_v12 = vpop.f32.mrb[10].mxu0 }
 0x110   : > { %v1060_v13 = vpop.f32.mrb[10].mxu1  ;;  %456 = vst [vmem:[%s987_s30 + $0x58] sm:$0xff] %v765_v12  ;;  %v336_v14 = vpop.f32.mrb[11].mxu0 }
 0x111   : > { %472 = vst [vmem:[%s987_s30 + $0xd8] sm:$0xff] %v1060_v13  ;;  %v1065_v15 = vpop.f32.mrb[11].mxu1  ;;  %455 = vst [vmem:[%s987_s30 + $0x50] sm:$0xff] %v336_v14 }
 0x112   : > { %471 = vst [vmem:[%s987_s30 + $0xd0] sm:$0xff] %v1065_v15 }
 0x113   : > { %v768_v16 = vpop.f32.mrb[12].mxu0 }
 0x114   : > { %v1070_v17 = vpop.f32.mrb[12].mxu1  ;;  %458 = vst [vmem:[%s987_s30 + $0x68] sm:$0xff] %v768_v16  ;;  %v346_v18 = vpop.f32.mrb[13].mxu0  ;;  %480 = sbr.rel (%p665_p4) target bundleno = 283 (0x11b), region = 32 }
 0x115   : > { %474 = vst [vmem:[%s987_s30 + $0xe8] sm:$0xff] %v1070_v17  ;;  %v1075_v19 = vpop.f32.mrb[13].mxu1  ;;  %457 = vst [vmem:[%s987_s30 + $0x60] sm:$0xff] %v346_v18 }
 0x116   : > { %473 = vst [vmem:[%s987_s30 + $0xe0] sm:$0xff] %v1075_v19 }
 0x117   : > { %v771_v20 = vpop.f32.mrb[14].mxu0 }
 0x118   : > { %v1080_v21 = vpop.f32.mrb[14].mxu1  ;;  %460 = vst [vmem:[%s987_s30 + $0x78] sm:$0xff] %v771_v20  ;;  %v356_v22 = vpop.f32.mrb[15].mxu0 }
 0x119   : > { %476 = vst [vmem:[%s987_s30 + $0xf8] sm:$0xff] %v1080_v21  ;;  %v1085_v23 = vpop.f32.mrb[15].mxu1  ;;  %459 = vst [vmem:[%s987_s30 + $0x70] sm:$0xff] %v356_v22 }
 0x11a   : > { %475 = vst [vmem:[%s987_s30 + $0xf0] sm:$0xff] %v1085_v23 }
 0x11b PF: > { %v483_v25 = vadd.f32 %v989_v56, %v997_v58  ;;  %v523_v28 = vmul.f32 %v997_v58, %v997_v58  ;;  %v524_v29 = vmul.f32 %v989_v56, %v989_v56  ;;  %v525_v31 = vmul.f32 %v1013_v62, %v1013_v62 }
 0x11c   : > { %v526_v33 = vmul.f32 %v1005_v60, %v1005_v60  ;;  %v527_v36 = vmul.f32 %v306_v2, %v306_v2  ;;  %v528_v39 = vmul.f32 %v1021_v0, %v1021_v0  ;;  %v529_v42 = vmul.f32 %v316_v6, %v316_v6 }
 0x11d   : > { %v484_v26 = vadd.f32 %v483_v25, %v1013_v62  ;;  %v555_v34 = vadd.f32 %v524_v29, %v523_v28  ;;  %v530_v45 = vmul.f32 %v1034_v4, %v1034_v4  ;;  %v531_v48 = vmul.f32 %v326_v10, %v326_v10 }
 0x11e   : > { %v532_v51 = vmul.f32 %v1047_v8, %v1047_v8  ;;  %v533_v54 = vmul.f32 %v336_v14, %v336_v14  ;;  %v534_v58 = vmul.f32 %v765_v12, %v765_v12  ;;  %v537_v25 = vmul.f32 %v356_v22, %v356_v22 }
 0x11f   : > { %v485_v27 = vadd.f32 %v1005_v60, %v484_v26  ;;  %v556_v37 = vadd.f32 %v555_v34, %v525_v31 }
 0x121   : > { %v486_v30 = vadd.f32 %v485_v27, %v306_v2  ;;  %v557_v40 = vadd.f32 %v556_v37, %v526_v33  ;;  %v542_v33 = vmul.f32 %v1007_v61, %v1007_v61  ;;  %v544_v37 = vmul.f32 %v1023_v1, %v1023_v1 }
 0x123   : > { %v487_v32 = vadd.f32 %v1021_v0, %v486_v30  ;;  %v558_v43 = vadd.f32 %v557_v40, %v527_v36  ;;  %v535_v0 = vmul.f32 %v346_v18, %v346_v18 }
 0x125   : > { %v488_v35 = vadd.f32 %v487_v32, %v316_v6  ;;  %v559_v46 = vadd.f32 %v558_v43, %v528_v39  ;;  %v545_v39 = vmul.f32 %v1042_v7, %v1042_v7  ;;  %v547_v43 = vmul.f32 %v1055_v11, %v1055_v11 }
 0x127   : > { %v489_v38 = vadd.f32 %v1034_v4, %v488_v35  ;;  %v560_v49 = vadd.f32 %v559_v46, %v529_v42  ;;  %v536_v4 = vmul.f32 %v768_v16, %v768_v16  ;;  %v543_v35 = vmul.f32 %v1029_v3, %v1029_v3 }
 0x129   : > { %v490_v41 = vadd.f32 %v489_v38, %v326_v10  ;;  %v561_v52 = vadd.f32 %v560_v49, %v530_v45  ;;  %v548_v45 = vmul.f32 %v1049_v9, %v1049_v9  ;;  %v550_v49 = vmul.f32 %v1060_v13, %v1060_v13 }
 0x12b   : > { %v491_v44 = vadd.f32 %v1047_v8, %v490_v41  ;;  %v562_v55 = vadd.f32 %v561_v52, %v531_v48  ;;  %v538_v8 = vmul.f32 %v771_v20, %v771_v20  ;;  %v546_v41 = vmul.f32 %v1036_v5, %v1036_v5 }
 0x12d   : > { %v492_v47 = vadd.f32 %v491_v44, %v336_v14  ;;  %v563_v60 = vadd.f32 %v562_v55, %v532_v51  ;;  %v551_v51 = vmul.f32 %v1075_v19, %v1075_v19  ;;  %v553_v55 = vmul.f32 %v1085_v23, %v1085_v23 }
 0x12f   : > { %v493_v50 = vadd.f32 %v765_v12, %v492_v47  ;;  %v564_v2 = vadd.f32 %v563_v60, %v533_v54  ;;  %v539_v12 = vmul.f32 %v999_v59, %v999_v59  ;;  %v549_v47 = vmul.f32 %v1065_v15, %v1065_v15 }
 0x131   : > { %v494_v53 = vadd.f32 %v493_v50, %v346_v18  ;;  %v565_v24 = vadd.f32 %v564_v2, %v534_v58 }
 0x133   : > { %v495_v56 = vadd.f32 %v768_v16, %v494_v53  ;;  %v566_v26 = vadd.f32 %v565_v24, %v535_v0  ;;  %v540_v16 = vmul.f32 %v991_v57, %v991_v57  ;;  %v552_v53 = vmul.f32 %v1070_v17, %v1070_v17 }
 0x135   : > { %v496_v62 = vadd.f32 %v495_v56, %v356_v22  ;;  %v567_v28 = vadd.f32 %v566_v26, %v536_v4  ;;  %v541_v22 = vmul.f32 %v1015_v63, %v1015_v63 }
 0x137   : > { %v497_v6 = vadd.f32 %v771_v20, %v496_v62  ;;  %v568_v29 = vadd.f32 %v567_v28, %v537_v25 }
 0x139   : > { %v498_v10 = vadd.f32 %v497_v6, %v999_v59  ;;  %v569_v30 = vadd.f32 %v568_v29, %v538_v8 }
 0x13b   : > { %v499_v27 = vadd.f32 %v991_v57, %v498_v10  ;;  %v570_v32 = vadd.f32 %v569_v30, %v539_v12 }
 0x13d   : > { %v500_v14 = vadd.f32 %v499_v27, %v1015_v63  ;;  %v571_v34 = vadd.f32 %v570_v32, %v540_v16  ;;  %v522_v27 = vld [vmem:[%s1182_s3 + $0x1] sm:$0x1] }
 0x13f   : > { %v501_v18 = vadd.f32 %v1007_v61, %v500_v14  ;;  %v572_v36 = vadd.f32 %v571_v34, %v541_v22 }
 0x141   : > { %v502_v31 = vadd.f32 %v501_v18, %v1029_v3  ;;  %v573_v38 = vadd.f32 %v572_v36, %v542_v33 }
 0x143   : > { %v503_v20 = vadd.f32 %v1023_v1, %v502_v31  ;;  %v574_v40 = vadd.f32 %v573_v38, %v543_v35 }
 0x145   : > { %v504_v59 = vadd.f32 %v503_v20, %v1042_v7  ;;  %v575_v42 = vadd.f32 %v574_v40, %v544_v37 }
 0x147   : > { %v505_v57 = vadd.f32 %v1036_v5, %v504_v59  ;;  %v576_v44 = vadd.f32 %v575_v42, %v545_v39 }
 0x149   : > { %v506_v63 = vadd.f32 %v505_v57, %v1055_v11  ;;  %v577_v46 = vadd.f32 %v576_v44, %v546_v41 }
 0x14b   : > { %v507_v61 = vadd.f32 %v1049_v9, %v506_v63  ;;  %v578_v48 = vadd.f32 %v577_v46, %v547_v43 }
 0x14d   : > { %v508_v3 = vadd.f32 %v507_v61, %v1065_v15  ;;  %v579_v50 = vadd.f32 %v578_v48, %v548_v45 }
 0x14f   : > { %v509_v1 = vadd.f32 %v1060_v13, %v508_v3  ;;  %v580_v52 = vadd.f32 %v579_v50, %v549_v47  ;;  %v554_v13 = vmul.f32 %v1080_v21, %v1080_v21 }
 0x151   : > { %v510_v7 = vadd.f32 %v509_v1, %v1075_v19  ;;  %v581_v54 = vadd.f32 %v580_v52, %v550_v49 }
 0x153   : > { %v511_v5 = vadd.f32 %v1070_v17, %v510_v7  ;;  %v582_v56 = vadd.f32 %v581_v54, %v551_v51  ;;  %v482_v17 = vld [vmem:[%s1182_s3] sm:$0x1] }
 0x155   : > { %v512_v11 = vadd.f32 %v511_v5, %v1085_v23  ;;  %v583_v60 = vadd.f32 %v582_v56, %v552_v53 }
 0x157   : > { %v513_v9 = vadd.f32 %v1080_v21, %v512_v11  ;;  %v584_v0 = vadd.f32 %v583_v60, %v553_v55 }
 0x159   : > { %v514_v15 = vrot.slane %v513_v9, 4  ;;  %v585_v2 = vadd.f32 %v584_v0, %v554_v13 }
 0x15b   : > { %v515_v58 = vadd.f32 %v514_v15, %v513_v9  ;;  %v586_v4 = vrot.slane %v585_v2, 4 }
 0x15d   : > { %v516_v62 = vrot.slane %v515_v58, 2  ;;  %v587_v10 = vadd.f32 %v586_v4, %v585_v2 }
 0x15f   : > { %v517_v19 = vadd.f32 %v516_v62, %v515_v58  ;;  %v588_v23 = vrot.slane %v587_v10, 2 }
 0x161   : > { %v518_v6 = vrot.slane %v517_v19, 1  ;;  %v589_v21 = vadd.f32 %v588_v23, %v587_v10 }
 0x163   : > { %v519_v24 = vadd.f32 %v518_v6, %v517_v19  ;;  %v590_v26 = vrot.slane %v589_v21, 1 }
 0x165   : > { %v520_v25 = vadd.f32 %v519_v24, %v482_v17  ;;  %v591_v8 = vadd.f32 %v590_v26, %v589_v21 }
 0x167   : > { %521 = vst [vmem:[%s1182_s3] sm:$0x1] %v520_v25  ;;  %v592_v28 = vadd.f32 %v591_v8, %v522_v27 }
 0x169   : > { %593 = vst [vmem:[%s1182_s3 + $0x1] sm:$0x1] %v592_v28 }
 0x16a PF: > { %s14_s12 = sadd.s32 1, %s859_s12  }
 0x16b   : > { %p11_p5 = scmp.ge.s32.totalorder %s14_s12, 4  }
 0x16d   :  { %13 = sbr.rel (!%p11_p5) target bundleno = 1 (0x1), region = 70 }

</bundles_post_ra>
